<compile_context>
chip_gen: v7x
topology: tpu7x:2x2x1
jax: 0.10.0
libtpu: 0.0.40
codegen_flags: <defaults>
</compile_context>

<pallas_src>
import jax
import jax.numpy as jnp
from jax.experimental import pallas as pl
from jax.experimental.pallas import tpu as pltpu


def _round_up(x, m):
    return ((x + m - 1) // m) * m


def _vmem_capacity_bytes():
    try:
        info = pltpu.get_tpu_info()
        cap = getattr(info, "vmem_capacity_bytes", None)
        if cap:
            return int(cap)
    except Exception:
        pass
    return 64 << 20  # conservative fallback (v7x-sized)


def _device_kind():
    try:
        return jax.devices()[0].device_kind.lower()
    except Exception:
        return ""


# --------------------------------------------------------------------------
# Kernel bodies
# --------------------------------------------------------------------------
def _mlp_body(x_ref, w1_ref, b1_ref, w2_ref, b2_ref, o_ref, acc_ref):
    """One (row-tile i, d_ff-slab j) step.

    x_ref : (tile_m, d_model)   input dtype (cast to bf16 in-kernel)
    w1_ref: (d_model, tile_ff)  bf16   column slab of W1
    b1_ref: (1, tile_ff)        f32
    w2_ref: (tile_ff, d_model)  bf16   row slab of W2
    b2_ref: (1, d_model)        f32
    o_ref : (tile_m, d_model)   output dtype
    acc_ref: (tile_m, d_model)  f32 accumulator (scratch, or o_ref itself when
                                the output dtype is float32)
    """
    j = pl.program_id(1)
    last = pl.num_programs(1) - 1

    x = x_ref[...].astype(w1_ref.dtype)                       # bf16 MXU operand
    h = jnp.dot(x, w1_ref[...], preferred_element_type=jnp.float32)
    h = h + b1_ref[...]
    h = h * jax.nn.sigmoid(1.702 * h)                         # quick_gelu (f32)
    contrib = jnp.dot(h.astype(w2_ref.dtype), w2_ref[...],
                      preferred_element_type=jnp.float32)

    @pl.when(j == 0)
    def _():
        acc_ref[...] = contrib                                # direct write, no zero-init

    @pl.when(j != 0)
    def _():
        acc_ref[...] += contrib

    @pl.when(j == last)
    def _():
        # b2 added once, in f32; resid_dropout(p=0.0) is identity.
        o_ref[...] = (acc_ref[...] + b2_ref[...]).astype(o_ref.dtype)


def _mlp_kernel_scratch(x_ref, w1_ref, b1_ref, w2_ref, b2_ref, o_ref, acc_ref):
    _mlp_body(x_ref, w1_ref, b1_ref, w2_ref, b2_ref, o_ref, acc_ref)


def _mlp_kernel_accout(x_ref, w1_ref, b1_ref, w2_ref, b2_ref, o_ref):
    # f32 output: the VMEM-resident output block IS the accumulator.
    _mlp_body(x_ref, w1_ref, b1_ref, w2_ref, b2_ref, o_ref, o_ref)


# --------------------------------------------------------------------------
# Weight preparation (done once, amortized across calls)
# --------------------------------------------------------------------------
def prepare_mlp_params(w1, b1, w2, b2):
    """Cast weights to bf16 and pad d_ff to a lane multiple, once."""
    d_model, d_ff = w1.shape
    Fp = _round_up(d_ff, 128)
    w1b = w1.astype(jnp.bfloat16)
    w2b = w2.astype(jnp.bfloat16)
    b1f = b1.astype(jnp.float32)
    if Fp != d_ff:
        # zero padding is exact: gelu(0)=0 and padded W2 rows are zero.
        w1b = jnp.pad(w1b, ((0, 0), (0, Fp - d_ff)))
        w2b = jnp.pad(w2b, ((0, Fp - d_ff), (0, 0)))
        b1f = jnp.pad(b1f, ((0, Fp - d_ff),))
    return {
        "w1": w1b,                                   # (d_model, Fp) bf16
        "b1": b1f.reshape(1, Fp),                    # (1, Fp)       f32
        "w2": w2b,                                   # (Fp, d_model) bf16
        "b2": b2.astype(jnp.float32).reshape(1, d_model),
        "d_model": d_model,
        "d_ff": d_ff,
    }


# --------------------------------------------------------------------------
# Tile selection (VMEM- and generation-aware)
# --------------------------------------------------------------------------
def _select_tiles(M, d_model, Fp, x_bytes, out_bytes, acc_in_out):
    vmem_cap = _vmem_capacity_bytes()
    small_vmem = vmem_cap < (96 << 20)            # v7x-class (64 MiB / TC, 2 TCs)
    kind = _device_kind()
    budget = min(int(0.85 * vmem_cap), vmem_cap - (8 << 20))

    def ws(tm, tff):
        s = 2 * tm * d_model * x_bytes            # x blocks (double-buffered)
        s += 2 * tm * d_model * out_bytes         # out blocks (double-buffered)
        s += 2 * 2 * (d_model * tff * 2)          # W1 + W2 slabs (bf16, 2-deep)
        s += 2 * (tff * 4 + d_model * 4)          # b1 / b2 (f32)
        if not acc_in_out:
            s += tm * d_model * 4                 # f32 accumulator scratch
        s += 2 * tm * tff * 4                     # live f32 intermediates (h, gelu)
        return s

    # ---- tile_m ----
    if M <= 256:
        tile_m = _round_up(M, 16)                 # bf16 native (16,128) tile
    else:
        if "v5" in kind:
            prefer = 512                          # v5e already MXU-bound at 512
        else:
            prefer = 768 if small_vmem else 1024  # v7x vs v6e
        tile_m = min(prefer, _round_up(M, 256))
        # v7x: ensure >= 2 row tiles so both TensorCores get work.
        if small_vmem and _round_up(M, tile_m) // tile_m < 2:
            tile_m = max(256, _round_up((M + 1) // 2, 16))

    # ---- tile_ff (and shrink tile_m if nothing fits) ----
    while True:
        if ws(tile_m, Fp) <= budget:
            # Weights-resident fast path: W1/W2 block index is constant over
            # the whole grid -> weights DMA'd from HBM exactly once.
            return tile_m, Fp, ws(tile_m, Fp), vmem_cap
        for tff in (1024, 512, 256, 128):
            if Fp % tff == 0 and ws(tile_m, tff) <= budget:
                return tile_m, tff, ws(tile_m, tff), vmem_cap
        if tile_m <= 16:
            tff = 128 if Fp % 128 == 0 else Fp
            return tile_m, tff, ws(tile_m, tff), vmem_cap
        tile_m = max(16, _round_up(tile_m // 2, 16))


# --------------------------------------------------------------------------
# Forward
# --------------------------------------------------------------------------
def mlp_forward(x, params, *, tile_m=None, tile_ff=None):
    """x: (batch, seq, d_model) -> (batch, seq, d_model)."""
    w1b, b1r, w2b, b2r = params["w1"], params["b1"], params["w2"], params["b2"]
    d_model = params["d_model"]
    Fp = w1b.shape[1]

    B, T, _ = x.shape
    M = B * T
    out_dtype = x.dtype
    x_bytes = jnp.dtype(x.dtype).itemsize
    out_bytes = jnp.dtype(out_dtype).itemsize
    acc_in_out = (jnp.dtype(out_dtype) == jnp.float32)

    auto_tm, auto_tff, _, vmem_cap = _select_tiles(
        M, d_model, Fp, x_bytes, out_bytes, acc_in_out)
    if tile_m is None:
        tile_m = auto_tm
    if tile_ff is None:
        tile_ff = auto_tff
    assert Fp % tile_ff == 0, "tile_ff must divide the padded d_ff"

    Mp = _round_up(M, tile_m)
    n_rows = Mp // tile_m
    n_ff = Fp // tile_ff

    # Row-pad activations only (weights already prepared once outside).
    xf = x.reshape(M, d_model)
    if Mp != M:
        xf = jnp.pad(xf, ((0, Mp - M), (0, 0)))

    # Working set for the explicit VMEM limit (double-buffered streams +
    # accumulator + live intermediates), capped below physical VMEM.
    ws_bytes = (2 * tile_m * d_model * x_bytes
                + 2 * tile_m * d_model * out_bytes
                + 2 * 2 * (d_model * tile_ff * 2)
                + 2 * (tile_ff * 4 + d_model * 4)
                + (0 if acc_in_out else tile_m * d_model * 4)
                + 2 * tile_m * tile_ff * 4)
    vmem_limit = int(min(ws_bytes + (16 << 20), vmem_cap - (8 << 20)))

    weight_pass_bytes = 2 * d_model * Fp * 2 + Fp * 4 + d_model * 4
    cost = pl.CostEstimate(
        flops=4 * Mp * d_model * Fp,
        transcendentals=Mp * Fp,
        bytes_accessed=(Mp * d_model * (x_bytes + out_bytes)
                        + (1 if n_ff == 1 else n_rows) * weight_pass_bytes),
    )

    in_specs = [
        pl.BlockSpec((tile_m, d_model), lambda i, j: (i, 0)),    # x tile
        pl.BlockSpec((d_model, tile_ff), lambda i, j: (0, j)),   # W1 slab
        pl.BlockSpec((1, tile_ff), lambda i, j: (0, j)),         # b1 slab
        pl.BlockSpec((tile_ff, d_model), lambda i, j: (j, 0)),   # W2 slab
        pl.BlockSpec((1, d_model), lambda i, j: (0, 0)),         # b2 (constant)
    ]
    out_spec = pl.BlockSpec((tile_m, d_model), lambda i, j: (i, 0))

    if acc_in_out:
        kernel = _mlp_kernel_accout
        scratch_shapes = []
    else:
        kernel = _mlp_kernel_scratch
        scratch_shapes = [pltpu.VMEM((tile_m, d_model), jnp.float32)]

    out = pl.pallas_call(
        kernel,
        out_shape=jax.ShapeDtypeStruct((Mp, d_model), out_dtype),
        grid_spec=pltpu.PrefetchScalarGridSpec(
            num_scalar_prefetch=0,
            grid=(n_rows, n_ff),                                 # reduction last
            in_specs=in_specs,
            out_specs=out_spec,
            scratch_shapes=scratch_shapes,
        ),
        compiler_params=pltpu.CompilerParams(
            dimension_semantics=("parallel", "arbitrary"),
            vmem_limit_bytes=vmem_limit,
        ),
        cost_estimate=cost,
    )(xf, w1b, b1r, w2b, b2r)

    return out[:M].reshape(B, T, d_model)


# --------------------------------------------------------------------------
# Demo / self-check
# --------------------------------------------------------------------------
if __name__ == "__main__":
    key = jax.random.PRNGKey(0)
    kx, k1, k2, kb1, kb2 = jax.random.split(key, 5)

    batch, seq, d_model, d_ff = 2, 8, 32, 128
    x = jax.random.normal(kx, (batch, seq, d_model), jnp.float32)
    # Conv1D-style init, plus non-zero biases so the bias paths are exercised.
    w1 = 0.02 * jax.random.normal(k1, (d_model, d_ff), jnp.float32)
    b1 = 0.1 * jax.random.normal(kb1, (d_ff,), jnp.float32)
    w2 = 0.02 * jax.random.normal(k2, (d_ff, d_model), jnp.float32)
    b2 = 0.1 * jax.random.normal(kb2, (d_model,), jnp.float32)

    params = prepare_mlp_params(w1, b1, w2, b2)
    out = jax.block_until_ready(mlp_forward(x, params))

    # Reference with identical bf16 MXU-operand casting (structure check).
    xb = x.reshape(-1, d_model).astype(jnp.bfloat16)
    h = jnp.dot(xb, w1.astype(jnp.bfloat16), preferred_element_type=jnp.float32) + b1
    h = h * jax.nn.sigmoid(1.702 * h)
    ref_bf16 = (jnp.dot(h.astype(jnp.bfloat16), w2.astype(jnp.bfloat16),
                        preferred_element_type=jnp.float32) + b2)
    ref_bf16 = ref_bf16.reshape(batch, seq, d_model).astype(x.dtype)
    assert jnp.allclose(out, ref_bf16, atol=1e-3, rtol=1e-3), "mismatch vs bf16 ref"

    # Sanity vs the module's full-f32 math (looser: bf16 matmul operands).
    hf = x.reshape(-1, d_model) @ w1 + b1
    hf = hf * jax.nn.sigmoid(1.702 * hf)
    ref_f32 = (hf @ w2 + b2).reshape(batch, seq, d_model)
    assert jnp.allclose(out, ref_f32, atol=2e-2, rtol=2e-2), "mismatch vs f32 ref"

    # Second config: bf16 activations (scratch-accumulator path) and a
    # streamed d_ff (n_ff > 1) to exercise the reduction axis.
    d_ff2 = 256
    w1_2 = 0.02 * jax.random.normal(k1, (d_model, d_ff2), jnp.float32)
    b1_2 = 0.1 * jax.random.normal(kb1, (d_ff2,), jnp.float32)
    w2_2 = 0.02 * jax.random.normal(k2, (d_ff2, d_model), jnp.float32)
    params2 = prepare_mlp_params(w1_2, b1_2, w2_2, b2)
    x16 = x.astype(jnp.bfloat16)
    out2 = jax.block_until_ready(mlp_forward(x16, params2, tile_ff=128))

    h2 = jnp.dot(x16.reshape(-1, d_model), w1_2.astype(jnp.bfloat16),
                 preferred_element_type=jnp.float32) + b1_2
    h2 = h2 * jax.nn.sigmoid(1.702 * h2)
    ref2 = (jnp.dot(h2.astype(jnp.bfloat16), w2_2.astype(jnp.bfloat16),
                    preferred_element_type=jnp.float32) + b2)
    ref2 = ref2.reshape(batch, seq, d_model).astype(jnp.bfloat16)
    assert jnp.allclose(out2.astype(jnp.float32), ref2.astype(jnp.float32),
                        atol=3e-2, rtol=3e-2), "mismatch vs bf16-activation ref"

    print("KERNEL_OK")
</pallas_src>

<mosaic_0001>
module attributes {stable_mosaic.version = 11 : i64} {
  func.func @_mlp_kernel_accout(%arg0: i32, %arg1: i32, %arg2: memref<16x32xf32, #tpu.memory_space<vmem>>, %arg3: memref<32x128xbf16, #tpu.memory_space<vmem>>, %arg4: memref<1x128xf32, #tpu.memory_space<vmem>>, %arg5: memref<128x32xbf16, #tpu.memory_space<vmem>>, %arg6: memref<1x32xf32, #tpu.memory_space<vmem>>, %arg7: memref<16x32xf32, #tpu.memory_space<vmem>>) attributes {dimension_semantics = [#tpu.dimension_semantics<parallel>, #tpu.dimension_semantics<arbitrary>], iteration_bounds = array<i64: 1, 1>, scalar_prefetch = 0 : i64, scratch_operands = 0 : i64, tpu.core_type = #tpu.core_type<tc>, window_params = [{transform_indices = @transform_0, window_bounds = array<i64: 16, 32>}, {transform_indices = @transform_1, window_bounds = array<i64: 32, 128>}, {transform_indices = @transform_2, window_bounds = array<i64: 1, 128>}, {transform_indices = @transform_3, window_bounds = array<i64: 128, 32>}, {pipeline_mode = #tpu.pipeline_mode<synchronous>, transform_indices = @transform_4, window_bounds = array<i64: 1, 32>}, {transform_indices = @transform_5, window_bounds = array<i64: 16, 32>}]} {
    %c0 = arith.constant 0 : index
    %c0_0 = arith.constant 0 : index
    %0 = vector.load %arg2[%c0, %c0_0] : memref<16x32xf32, #tpu.memory_space<vmem>>, vector<16x32xf32>
    %1 = arith.truncf %0 : vector<16x32xf32> to vector<16x32xbf16>
    %c0_1 = arith.constant 0 : index
    %c0_2 = arith.constant 0 : index
    %2 = vector.load %arg3[%c0_1, %c0_2] : memref<32x128xbf16, #tpu.memory_space<vmem>>, vector<32x128xbf16>
    %cst = arith.constant dense<0.000000e+00> : vector<16x128xf32>
    %3 = tpu.matmul %1, %2, %cst {dimension_numbers = #tpu.dot_dimension_numbers<[1], [0], [0], [1], [0, 0, 1, 1], [], []>} : vector<16x32xbf16>, vector<32x128xbf16>, vector<16x128xf32> -> vector<16x128xf32>
    %c0_3 = arith.constant 0 : index
    %c0_4 = arith.constant 0 : index
    %4 = vector.load %arg4[%c0_3, %c0_4] : memref<1x128xf32, #tpu.memory_space<vmem>>, vector<1x128xf32>
    %5 = vector.broadcast %4 : vector<1x128xf32> to vector<16x128xf32>
    %6 = arith.addf %3, %5 : vector<16x128xf32>
    %cst_5 = arith.constant 1.702000e+00 : f32
    %7 = vector.broadcast %cst_5 : f32 to vector<16x128xf32>
    %8 = arith.mulf %7, %6 : vector<16x128xf32>
    %9 = arith.negf %8 : vector<16x128xf32>
    %10 = math.exp %9 : vector<16x128xf32>
    %cst_6 = arith.constant 1.000000e+00 : f32
    %11 = vector.broadcast %cst_6 : f32 to vector<16x128xf32>
    %12 = arith.addf %11, %10 : vector<16x128xf32>
    %13 = arith.divf %11, %12 : vector<16x128xf32>
    %14 = arith.mulf %6, %13 : vector<16x128xf32>
    %15 = arith.truncf %14 : vector<16x128xf32> to vector<16x128xbf16>
    %c0_7 = arith.constant 0 : index
    %c0_8 = arith.constant 0 : index
    %16 = vector.load %arg5[%c0_7, %c0_8] : memref<128x32xbf16, #tpu.memory_space<vmem>>, vector<128x32xbf16>
    %cst_9 = arith.constant dense<0.000000e+00> : vector<16x32xf32>
    %17 = tpu.matmul %15, %16, %cst_9 {dimension_numbers = #tpu.dot_dimension_numbers<[1], [0], [0], [1], [0, 0, 1, 1], [], []>} : vector<16x128xbf16>, vector<128x32xbf16>, vector<16x32xf32> -> vector<16x32xf32>
    %c0_i32 = arith.constant 0 : i32
    %18 = arith.cmpi eq, %arg1, %c0_i32 : i32
    %19 = arith.extui %18 : i1 to i32
    %c0_i32_10 = arith.constant 0 : i32
    %20 = arith.cmpi ne, %19, %c0_i32_10 : i32
    scf.if %20 {
      %c0_15 = arith.constant 0 : index
      %c0_16 = arith.constant 0 : index
      %27 = vector.load %arg7[%c0_15, %c0_16] : memref<16x32xf32, #tpu.memory_space<vmem>>, vector<16x32xf32>
      tpu.vector_store %arg7[%c0_15, %c0_16], %17 {strides = array<i32>} : memref<16x32xf32, #tpu.memory_space<vmem>>, vector<16x32xf32>,
    } else {
    }
    %c0_i32_11 = arith.constant 0 : i32
    %21 = arith.cmpi ne, %arg1, %c0_i32_11 : i32
    %22 = arith.extui %21 : i1 to i32
    %c0_i32_12 = arith.constant 0 : i32
    %23 = arith.cmpi ne, %22, %c0_i32_12 : i32
    scf.if %23 {
      %c0_15 = arith.constant 0 : index
      %c0_16 = arith.constant 0 : index
      %27 = vector.load %arg7[%c0_15, %c0_16] : memref<16x32xf32, #tpu.memory_space<vmem>>, vector<16x32xf32>
      %28 = arith.addf %27, %17 : vector<16x32xf32>
      %c0_17 = arith.constant 0 : index
      %c0_18 = arith.constant 0 : index
      %29 = vector.load %arg7[%c0_17, %c0_18] : memref<16x32xf32, #tpu.memory_space<vmem>>, vector<16x32xf32>
      tpu.vector_store %arg7[%c0_17, %c0_18], %28 {strides = array<i32>} : memref<16x32xf32, #tpu.memory_space<vmem>>, vector<16x32xf32>,
    } else {
    }
    %c0_i32_13 = arith.constant 0 : i32
    %24 = arith.cmpi eq, %arg1, %c0_i32_13 : i32
    %25 = arith.extui %24 : i1 to i32
    %c0_i32_14 = arith.constant 0 : i32
    %26 = arith.cmpi ne, %25, %c0_i32_14 : i32
    scf.if %26 {
      %c0_15 = arith.constant 0 : index
      %c0_16 = arith.constant 0 : index
      %27 = vector.load %arg7[%c0_15, %c0_16] : memref<16x32xf32, #tpu.memory_space<vmem>>, vector<16x32xf32>
      %c0_17 = arith.constant 0 : index
      %c0_18 = arith.constant 0 : index
      %28 = vector.load %arg6[%c0_17, %c0_18] : memref<1x32xf32, #tpu.memory_space<vmem>>, vector<1x32xf32>
      %29 = vector.broadcast %28 : vector<1x32xf32> to vector<16x32xf32>
      %30 = arith.addf %27, %29 : vector<16x32xf32>
      %c0_19 = arith.constant 0 : index
      %c0_20 = arith.constant 0 : index
      %31 = vector.load %arg7[%c0_19, %c0_20] : memref<16x32xf32, #tpu.memory_space<vmem>>, vector<16x32xf32>
      tpu.vector_store %arg7[%c0_19, %c0_20], %30 {strides = array<i32>} : memref<16x32xf32, #tpu.memory_space<vmem>>, vector<16x32xf32>,
    } else {
    }
    return
  }
  func.func @transform_0(%arg0: i32, %arg1: i32) -> (i32, i32) {
    %c0_i32 = arith.constant 0 : i32
    %c0_i32_0 = arith.constant 0 : i32
    return %arg0, %c0_i32 : i32, i32
  }
  func.func @transform_1(%arg0: i32, %arg1: i32) -> (i32, i32) {
    %c0_i32 = arith.constant 0 : i32
    %c0_i32_0 = arith.constant 0 : i32
    return %c0_i32, %arg1 : i32, i32
  }
  func.func @transform_2(%arg0: i32, %arg1: i32) -> (i32, i32) {
    %c0_i32 = arith.constant 0 : i32
    %c0_i32_0 = arith.constant 0 : i32
    return %c0_i32, %arg1 : i32, i32
  }
  func.func @transform_3(%arg0: i32, %arg1: i32) -> (i32, i32) {
    %c0_i32 = arith.constant 0 : i32
    %c0_i32_0 = arith.constant 0 : i32
    return %arg1, %c0_i32 : i32, i32
  }
  func.func @transform_4(%arg0: i32, %arg1: i32) -> (i32, i32) {
    %c0_i32 = arith.constant 0 : i32
    %c0_i32_0 = arith.constant 0 : i32
    %c0_i32_1 = arith.constant 0 : i32
    return %c0_i32, %c0_i32_0 : i32, i32
  }
  func.func @transform_5(%arg0: i32, %arg1: i32) -> (i32, i32) {
    %c0_i32 = arith.constant 0 : i32
    %c0_i32_0 = arith.constant 0 : i32
    return %arg0, %c0_i32 : i32, i32
  }
}

</mosaic_0001>

<bundles_post_ra>
// kernel: tpu_custom_call.1
= control target key start
LH: loop header
LB: loop body
LE: loop exit
PB: predicated region body
PF: predicated region fallthrough
CT: control target
= control target key end

     0   :  { %v365_v1 = vmov 0.0   ;;  %vm366_vm0 = vmmov 0   ;;  %vm48_vm1 = vcmask 261120   ;;  %s459_s0 = inlined_call_operand.vmem [shape: f32[16,32], index: 0, kind: input, shape index: {}]   ;;  %s460_s1 = inlined_call_operand.vmem [shape: bf16[32,128], index: 1, kind: input, shape index: {}]   ;;  %s461_s2 = inlined_call_operand.vmem [shape: f32[1,128], index: 2, kind: input, shape index: {}]   ;;  %s462_s3 = inlined_call_operand.vmem [shape: bf16[128,32], index: 3, kind: input, shape index: {}]   ;;  %s463_s4 = inlined_call_operand.vmem [shape: f32[1,32], index: 4, kind: input, shape index: {}]   ;;  %s464_s5 = inlined_call_operand.hbm [shape: f32[16,32], index: 5, kind: output, shape index: {}]  }
   0x1   :  { %v323_v0 = vld [vmem:[%s460_s1] sm:$0xff]   ;;  %290 = vmatprep.subr.bf16.mxu0 %v365_v1  ;;  %298 = vmatprep.subr.bf16.mxu1 %v365_v1  ;;  %v324_v2 = vld [vmem:[%s460_s1 + $0x8] sm:$0xff]  }
   0x2   :  { %291 = vmatpush3.bf16.msra.mxu0 %v323_v0  ;;  %294 = vmatprep.mubr.msk.bf16.mxu0 %vm366_vm0, %v365_v1  ;;  %v22_v3 = vld [vmem:[%s459_s0] sm:$0xff]  ;;  %v23_v4 = vld [vmem:[%s459_s0 + $0x8] sm:$0xff] }
   0x3   :  { %292 = vmatprep.subr.bf16.mxu0 %v365_v1  ;;  %314 = vmatprep.mubr.msk.bf16.mxu1 %vm366_vm0, %v365_v1  ;;  %v24_v5 = vpack.c.bf16 %v23_v4, %v22_v3 }
   0x6   :  { %293 = vmatpush3.bf16.msra.mxu0 %v324_v2 }
   0x7   :  { %10 = vsyncpa [#allocation3], 0  ;;  %v325_v6 = vld [vmem:[%s462_s3] sm:$0xff]   ;;  %v326_v7 = vld [vmem:[%s462_s3 + $0x8] sm:$0xff]   ;;  %s367_s17 = smov [#allocation2]  }
   0x8   :  { %299 = vmatpush3.bf16.msra.mxu1 %v325_v6  ;;  %v327_v8 = vld [vmem:[%s462_s3 + $0x10] sm:$0xff]   ;;  %v328_v9 = vld [vmem:[%s462_s3 + $0x18] sm:$0xff]   ;;  %v329_v10 = vld [vmem:[%s462_s3 + $0x20] sm:$0xff]   ;;  %s252_s18 = sshll.u32 %s367_s17, 4  ;;  %s253_s18 = int_to_ptr.vmem [resolvable:$true] %s252_s18 }
   0x9   :  { %295 = vmatmul.mubr.msk.bf16.vlgmr.msra.gmra.mrb[0].mxu0 %vm48_vm1, %v24_v5  ;;  %300 = vmatprep.subr.bf16.mxu1 %v365_v1  ;;  %v330_v11 = vld [vmem:[%s462_s3 + $0x28] sm:$0xff]   ;;  %v331_v12 = vld [vmem:[%s462_s3 + $0x30] sm:$0xff]   ;;  %v332_v13 = vld [vmem:[%s462_s3 + $0x38] sm:$0xff]   ;;  %s341_s19 = scalar_lea.vmem %s253_s18, 256  ;;  %p346_p1 = scmp.lt.s32.totalorder %s253_s18, %s253_s18 }
   0xa   :  { %v263_v14 = vld [vmem:[%s461_s2] ss:$0 sm:$0xff]  ;;  %p342_p0 = scmp.ne.s32.totalorder %s253_s18, %s341_s19  ;;  %p347_p2 = scmp.lt.s32.totalorder %s341_s19, %s341_s19 }
   0xb   :  { %v277_v38 = vld [vmem:[%s463_s4] ss:$0 sm:$0xff] }
   0xc   :  { %301 = vmatpush3.bf16.msra.mxu1 %v326_v7  ;;  %p348_p3 = por %p347_p2, %p346_p1 }
   0xd   :  { %302 = vmatprep.subr.bf16.mxu1 %v365_v1 }
   0xe   :  { %p349_p4 = pnand %p348_p3, %p342_p0 }
  0x10   :  { %303 = vmatpush3.bf16.msra.mxu1 %v327_v8 }
  0x11   :  { %304 = vmatprep.subr.bf16.mxu1 %v365_v1 }
  0x14   :  { %305 = vmatpush3.bf16.msra.mxu1 %v328_v9 }
  0x15   :  { %306 = vmatprep.subr.bf16.mxu1 %v365_v1 }
  0x18   :  { %307 = vmatpush3.bf16.msra.mxu1 %v329_v10 }
  0x19   :  { %308 = vmatprep.subr.bf16.mxu1 %v365_v1 }
  0x1c   :  { %309 = vmatpush3.bf16.msra.mxu1 %v330_v11 }
  0x1d   :  { %310 = vmatprep.subr.bf16.mxu1 %v365_v1 }
  0x20   :  { %311 = vmatpush3.bf16.msra.mxu1 %v331_v12 }
  0x21   :  { %312 = vmatprep.subr.bf16.mxu1 %v365_v1 }
  0x24   :  { %313 = vmatpush3.bf16.msra.mxu1 %v332_v13 }
  0xdc   :  { %v86_v15 = vpop.f32.mrb[0].mxu0 }
  0xdd   :  { %v87_v16 = vadd.f32 %v263_v14, %v86_v15  ;;  %v296_v17 = vpop.f32.mrb[1].mxu0 }
  0xde   :  { %v89_v18 = vpop.f32.mrb[2].mxu0 }
  0xdf   :  { %v267_v19 = vmul.f32 -1.702, %v87_v16  ;;  %v90_v20 = vadd.f32 %v263_v14, %v89_v18  ;;  %v297_v21 = vpop.f32.mrb[3].mxu0 }
  0xe1   :  { %v97_v22 = vmul.f32 1.442695, %v267_v19  ;;  %v268_v23 = vmul.f32 -1.702, %v90_v20 }
  0xe3   :  { %333 = vpow2.f32 %v97_v22  ;;  %v99_v24 = vmul.f32 1.442695, %v268_v23 }
  0xe5   :  { %335 = vpow2.f32 %v99_v24 }
  0xed   :  { %v334_v25 = vpop.eup %333 }
  0xee   :  { %v101_v26 = vadd.f32 1.0, %v334_v25 }
  0xef   :  { %v336_v27 = vpop.eup %335 }
  0xf0   :  { %337 = vrcp.f32 %v101_v26  ;;  %v102_v28 = vadd.f32 1.0, %v336_v27 }
  0xf2   :  { %339 = vrcp.f32 %v102_v28 }
  0xfa   :  { %v338_v29 = vpop.eup %337 }
  0xfb   :  { %v107_v31 = vmul.f32 %v338_v29, %v87_v16 }
  0xfc   :  { %v340_v30 = vpop.eup %339 }
  0xfd   :  { %v108_v32 = vmul.f32 %v340_v30, %v90_v20 }
  0xff   :  { %v109_v33 = vpack.c.bf16 %v108_v32, %v107_v31 }
 0x101   :  { %315 = vmatmul.mubr.bf16.vlgmr.msra.gmra.mrb[0].mxu1 %v109_v33 }
 0x1d4   :  { %v208_v34 = vpop.f32.mrb[0].mxu1 }
 0x1d5   :  { %219 = vst.msk [vmem:[#allocation2] sm:$0xff] %vm48_vm1, %v208_v34  ;;  %v316_v35 = vpop.f32.mrb[1].mxu1 }
 0x1d6   :  { %v211_v36 = vpop.f32.mrb[2].mxu1 }
 0x1d7   :  { %220 = vst.msk [vmem:[#allocation2 + $0x8] sm:$0xff] %vm48_vm1, %v211_v36  ;;  %v317_v37 = vpop.f32.mrb[3].mxu1 }
 0x1dc   :  { %v234_v39 = vld [vmem:[#allocation2] sm:$0xff] }
 0x1dd   :  { %v243_v40 = vadd.f32 %v277_v38, %v234_v39 }
 0x1de   :  { %v235_v41 = vld [vmem:[#allocation2 + $0x8] sm:$0xff] }
 0x1df   :  { %245 = vst.msk [vmem:[#allocation2] sm:$0xff] %vm48_vm1, %v243_v40  ;;  %v244_v42 = vadd.f32 %v277_v38, %v235_v41 }
 0x1e1   :  { %246 = vst.msk [vmem:[#allocation2 + $0x8] sm:$0xff] %vm48_vm1, %v244_v42 }
 0x1e2   :  { %352 = shalt.err (!%p349_p4)
}
 0x1e3   :  { %s353_s21 = scalar_lea.hbm %s464_s5, 256 }
 0x1e4   :  { %p354_p5 = scmp.ne.s32.totalorder %s464_s5, %s353_s21  ;;  %p357_p6 = scmp.lt.u32.totalorder %s353_s21, %s464_s5 }
 0x1e6   :  { %p359_p7 = pnand %p357_p6, %p354_p5 }
 0x1e8   :  { %362 = shalt.err (!%p359_p7)
}
 0x1e9   :  { %s368_s26 = smov 128   ;;  %s369_s1 = smov 8  }
 0x1ea   :  { %258 = dma.vmem_to_hbm [thread:$0]  %s253_s18, 256, %s464_s5, [#allocation3], %s368_s26, %s368_s26, %s369_s1  }
 0x1eb   :  { %363 = dma.done.wait [#allocation3], 256  }
 0x1ec   :  { %364 = vsyncadd [#allocation3], 4294967040 }
 0x1ed   :  { %262 = vsyncpa [#allocation3], 1 }

</bundles_post_ra>
